<compile_context>
chip_gen: v5e
topology: v5e:2x2
jax: 0.10.0
libtpu: 0.0.40
codegen_flags: <defaults>
</compile_context>

<pallas_src>
import functools
import math

import jax
import jax.numpy as jnp
from jax import lax
from jax.experimental import pallas as pl
from jax.experimental.pallas import tpu as pltpu

LANE = 128
SUBLANE = 8


def _round_up(x, m):
    return (x + m - 1) // m * m


def _pad_to(x, shape):
    pads = [(0, t - s) for s, t in zip(x.shape, shape)]
    if all(p == (0, 0) for p in pads):
        return x
    return jnp.pad(x, pads)


def _xavier_uniform(key, shape, gain):
    # torch nn.Linear weight shape: [fan_out, fan_in]
    fan_out, fan_in = shape
    bound = gain * math.sqrt(6.0 / (fan_in + fan_out))
    return jax.random.uniform(key, shape, jnp.float32, minval=-bound, maxval=bound)


# ---------------------------------------------------------------------------
# Kernel 1: source-node projection  n_ext = relu(h_src @ Q^T + b_ext)
# (padded bias column `hidden_dims` is 1.0 -> relu(0 + 1) = 1 "ones" column,
#  so (adj @ n_ext)[:, hidden_dims] accumulates the edge-weight row sums ws)
# ---------------------------------------------------------------------------
def _project_kernel(h_src_ref, qwt_ref, qb_ref, n_ref):
    n = jnp.dot(h_src_ref[...], qwt_ref[...], preferred_element_type=jnp.float32)
    n = jnp.maximum(n + qb_ref[...], 0.0)
    n_ref[...] = n.astype(n_ref.dtype)


# ---------------------------------------------------------------------------
# Kernel 2: tiled weighted aggregation + output projection + L2 normalization
# grid = (dst tiles, src tiles); src axis is the reduction axis.
# ---------------------------------------------------------------------------
def _aggregate_kernel(adj_ref, n_ref, hdst_ref, w1t_ref, w2t_ref, wb_ref,
                      out_ref, acc_ref, *, hidden_dims, compute_dtype,
                      approx_recip):
    k = pl.program_id(1)

    @pl.when(k == 0)
    def _init():
        acc_ref[...] = jnp.zeros_like(acc_ref)

    # acc += adj_tile @ n_ext_tile   (column `hidden_dims` accumulates ws, f32)
    acc_ref[...] += jnp.dot(adj_ref[...], n_ref[...],
                            preferred_element_type=jnp.float32)

    @pl.when(k == pl.num_programs(1) - 1)
    def _epilogue():
        acc = acc_ref[...]
        # ws lives in column `hidden_dims`: lane-select + XLU row reduce.
        col = lax.broadcasted_iota(jnp.int32, acc.shape, 1)
        ws = jnp.sum(jnp.where(col == hidden_dims, acc, 0.0),
                     axis=1, keepdims=True)
        ws = jnp.maximum(ws, 1.0)                        # .clamp(min=1)
        inv_ws = pl.reciprocal(ws, approx=approx_recip)  # EUP, per-row
        nh = acc * inv_ws                                # padded cols are dead

        # z = relu(W @ concat([agg/ws, h_dst]) + b) as split matmuls W=[W1|W2]
        z = (jnp.dot(nh.astype(compute_dtype), w1t_ref[...],
                     preferred_element_type=jnp.float32)
             + jnp.dot(hdst_ref[...], w2t_ref[...],
                       preferred_element_type=jnp.float32)
             + wb_ref[...])
        z = jnp.maximum(z, 0.0)

        # row-wise L2 normalization with zero-norm guard (padded cols are 0)
        norm = jnp.sqrt(jnp.sum(z * z, axis=1, keepdims=True))
        inv_norm = jnp.where(norm == 0.0, 1.0, 1.0 / norm)
        out_ref[...] = (z * inv_norm).astype(out_ref.dtype)


def weighted_sage_conv(h_src, h_dst, adj, q_w, q_b, w_w, w_b, hidden_dims,
                       *, tm=256, tk=512, compute_dtype=jnp.float32,
                       vmem_limit_bytes=32 * 1024 * 1024):
    """Forward pass of WeightedSAGEConv (eval mode) on TPU via Pallas."""
    n_src, input_dims = h_src.shape
    n_dst = h_dst.shape[0]
    output_dims = w_w.shape[0]

    f32 = jnp.float32
    cdt = compute_dtype

    # lane-dense padded widths; hidden gets +1 column to carry the ws row sums
    hidden_pad = _round_up(hidden_dims + 1, LANE)
    out_pad = _round_up(output_dims, LANE)

    # tile sizes (aligned) and padded node counts
    tm = min(_round_up(tm, SUBLANE), _round_up(n_dst, SUBLANE))
    tk = min(_round_up(tk, LANE), _round_up(n_src, LANE))
    n_dst_pad = _round_up(n_dst, tm)
    n_src_pad = _round_up(n_src, tk)
    grid_i = n_dst_pad // tm
    grid_k = n_src_pad // tk

    # parameters: transposed, zero-padded; extra bias column = 1.0 (ones trick)
    qwt = _pad_to(q_w.astype(f32).T, (input_dims, hidden_pad)).astype(cdt)
    qb = _pad_to(q_b.astype(f32).reshape(1, -1), (1, hidden_pad))
    qb = qb.at[0, hidden_dims].set(1.0)
    w1t = _pad_to(w_w[:, :hidden_dims].astype(f32).T,
                  (hidden_pad, out_pad)).astype(cdt)
    w2t = _pad_to(w_w[:, hidden_dims:].astype(f32).T,
                  (input_dims, out_pad)).astype(cdt)
    wb = _pad_to(w_b.astype(f32).reshape(1, -1), (1, out_pad))

    # node data / adjacency (zero padding is semantically inert)
    h_src_p = _pad_to(h_src.astype(f32), (n_src_pad, input_dims)).astype(cdt)
    h_dst_p = _pad_to(h_dst.astype(f32), (n_dst_pad, input_dims)).astype(cdt)
    adj_p = _pad_to(adj.astype(f32), (n_dst_pad, n_src_pad)).astype(cdt)

    # ---- stage 1: per-src-tile projection (hoisted out of the dst loop) ----
    n_ext = pl.pallas_call(
        _project_kernel,
        out_shape=jax.ShapeDtypeStruct((n_src_pad, hidden_pad), cdt),
        grid_spec=pltpu.PrefetchScalarGridSpec(
            num_scalar_prefetch=0,
            grid=(grid_k,),
            in_specs=[
                pl.BlockSpec((tk, input_dims), lambda s: (s, 0)),
                pl.BlockSpec((input_dims, hidden_pad), lambda s: (0, 0)),
                pl.BlockSpec((1, hidden_pad), lambda s: (0, 0)),
            ],
            out_specs=pl.BlockSpec((tk, hidden_pad), lambda s: (s, 0)),
        ),
        compiler_params=pltpu.CompilerParams(
            dimension_semantics=("parallel",),
            vmem_limit_bytes=vmem_limit_bytes),
    )(h_src_p, qwt, qb)

    # ---- stage 2: tiled aggregation + output projection + normalization ----
    flops = (2 * n_dst_pad * n_src_pad * hidden_pad
             + 2 * n_dst_pad * (hidden_pad + input_dims) * out_pad)
    bytes_accessed = (adj_p.size * adj_p.dtype.itemsize
                      + grid_i * n_ext.size * n_ext.dtype.itemsize
                      + h_dst_p.size * h_dst_p.dtype.itemsize
                      + n_dst_pad * out_pad * 4)
    cost = pl.CostEstimate(flops=flops, transcendentals=n_dst_pad,
                           bytes_accessed=bytes_accessed)

    kernel = functools.partial(_aggregate_kernel,
                               hidden_dims=hidden_dims,
                               compute_dtype=cdt,
                               approx_recip=(cdt != jnp.float32))

    out = pl.pallas_call(
        kernel,
        out_shape=jax.ShapeDtypeStruct((n_dst_pad, out_pad), f32),
        grid_spec=pltpu.PrefetchScalarGridSpec(
            num_scalar_prefetch=0,
            grid=(grid_i, grid_k),
            in_specs=[
                pl.BlockSpec((tm, tk), lambda i, k: (i, k)),            # adj
                pl.BlockSpec((tk, hidden_pad), lambda i, k: (k, 0)),    # n_ext
                pl.BlockSpec((tm, input_dims), lambda i, k: (i, 0)),    # h_dst
                pl.BlockSpec((hidden_pad, out_pad), lambda i, k: (0, 0)),
                pl.BlockSpec((input_dims, out_pad), lambda i, k: (0, 0)),
                pl.BlockSpec((1, out_pad), lambda i, k: (0, 0)),
            ],
            out_specs=pl.BlockSpec((tm, out_pad), lambda i, k: (i, 0)),
            scratch_shapes=[pltpu.VMEM((tm, hidden_pad), jnp.float32)],
        ),
        compiler_params=pltpu.CompilerParams(
            dimension_semantics=("parallel", "arbitrary"),
            vmem_limit_bytes=vmem_limit_bytes),
        cost_estimate=cost,
    )(adj_p, n_ext, h_dst_p, w1t, w2t, wb)

    return out[:n_dst, :output_dims]


def _reference(h_src, h_dst, adj, q_w, q_b, w_w, w_b, hidden_dims):
    n = jnp.maximum(h_src @ q_w.T + q_b, 0.0)
    agg = adj @ n
    ws = jnp.maximum(jnp.sum(adj, axis=1, keepdims=True), 1.0)
    cat = jnp.concatenate([agg / ws, h_dst], axis=1)
    z = jnp.maximum(cat @ w_w.T + w_b, 0.0)
    norm = jnp.linalg.norm(z, ord=2, axis=1, keepdims=True)
    norm = jnp.where(norm == 0.0, 1.0, norm)
    return z / norm


if __name__ == "__main__":
    key = jax.random.PRNGKey(0)
    input_dims, hidden_dims, output_dims = 16, 32, 16
    n_src, n_dst = 384, 64          # small, but gives a real (2 x 3) tile grid

    k1, k2, k3, k4, k5, k6 = jax.random.split(key, 6)
    gain = math.sqrt(2.0)  # nn.init.calculate_gain('relu')
    q_w = _xavier_uniform(k1, (hidden_dims, input_dims), gain)
    q_b = jnp.zeros((hidden_dims,), jnp.float32)
    w_w = _xavier_uniform(k2, (output_dims, input_dims + hidden_dims), gain)
    w_b = jnp.zeros((output_dims,), jnp.float32)

    h_src = jax.random.normal(k3, (n_src, input_dims), jnp.float32)
    h_dst = jax.random.normal(k4, (n_dst, input_dims), jnp.float32)

    # synthetic weighted graph as dense adjacency (edge weights >= 0)
    mask = (jax.random.uniform(k5, (n_dst, n_src)) < 0.25).astype(jnp.float32)
    adj = mask * jax.random.uniform(k6, (n_dst, n_src), minval=0.1, maxval=2.0)

    z_ref = _reference(h_src, h_dst, adj, q_w, q_b, w_w, w_b, hidden_dims)

    # f32 MXU path (tight check)
    z = weighted_sage_conv(h_src, h_dst, adj, q_w, q_b, w_w, w_b, hidden_dims,
                           tm=32, tk=128)
    z = jax.block_until_ready(z)
    assert z.shape == (n_dst, output_dims)
    assert jnp.allclose(z, z_ref, atol=1e-4, rtol=1e-4), "f32 mismatch vs reference"

    # bf16 MXU path with f32 accumulation (relaxed check)
    z_bf16 = weighted_sage_conv(h_src, h_dst, adj, q_w, q_b, w_w, w_b,
                                hidden_dims, tm=32, tk=128,
                                compute_dtype=jnp.bfloat16)
    z_bf16 = jax.block_until_ready(z_bf16)
    assert jnp.allclose(z_bf16, z_ref, atol=5e-2, rtol=5e-2), "bf16 mismatch vs reference"

    print("KERNEL_OK")
</pallas_src>

<mosaic_0001>
module attributes {stable_mosaic.version = 11 : i64} {
  func.func @_project_kernel(%arg0: i32, %arg1: memref<128x16xf32, #tpu.memory_space<vmem>>, %arg2: memref<16x128xf32, #tpu.memory_space<vmem>>, %arg3: memref<1x128xf32, #tpu.memory_space<vmem>>, %arg4: memref<128x128xf32, #tpu.memory_space<vmem>>) attributes {dimension_semantics = [#tpu.dimension_semantics<parallel>], iteration_bounds = array<i64: 3>, scalar_prefetch = 0 : i64, scratch_operands = 0 : i64, tpu.core_type = #tpu.core_type<tc>, window_params = [{transform_indices = @transform_0, window_bounds = array<i64: 128, 16>}, {pipeline_mode = #tpu.pipeline_mode<synchronous>, transform_indices = @transform_1, window_bounds = array<i64: 16, 128>}, {pipeline_mode = #tpu.pipeline_mode<synchronous>, transform_indices = @transform_2, window_bounds = array<i64: 1, 128>}, {transform_indices = @transform_3, window_bounds = array<i64: 128, 128>}]} {
    %c0 = arith.constant 0 : index
    %c0_0 = arith.constant 0 : index
    %0 = vector.load %arg1[%c0, %c0_0] : memref<128x16xf32, #tpu.memory_space<vmem>>, vector<128x16xf32>
    %c0_1 = arith.constant 0 : index
    %c0_2 = arith.constant 0 : index
    %1 = vector.load %arg2[%c0_1, %c0_2] : memref<16x128xf32, #tpu.memory_space<vmem>>, vector<16x128xf32>
    %cst = arith.constant dense<0.000000e+00> : vector<128x128xf32>
    %2 = tpu.matmul %0, %1, %cst {dimension_numbers = #tpu.dot_dimension_numbers<[1], [0], [0], [1], [0, 0, 1, 1], [], []>} : vector<128x16xf32>, vector<16x128xf32>, vector<128x128xf32> -> vector<128x128xf32>
    %c0_3 = arith.constant 0 : index
    %c0_4 = arith.constant 0 : index
    %3 = vector.load %arg3[%c0_3, %c0_4] : memref<1x128xf32, #tpu.memory_space<vmem>>, vector<1x128xf32>
    %4 = vector.broadcast %3 : vector<1x128xf32> to vector<128x128xf32>
    %5 = arith.addf %2, %4 : vector<128x128xf32>
    %cst_5 = arith.constant 0.000000e+00 : f32
    %6 = vector.broadcast %cst_5 : f32 to vector<128x128xf32>
    %7 = arith.maximumf %5, %6 : vector<128x128xf32>
    %c0_6 = arith.constant 0 : index
    %c0_7 = arith.constant 0 : index
    %8 = vector.load %arg4[%c0_6, %c0_7] : memref<128x128xf32, #tpu.memory_space<vmem>>, vector<128x128xf32>
    tpu.vector_store %arg4[%c0_6, %c0_7], %7 {strides = array<i32>} : memref<128x128xf32, #tpu.memory_space<vmem>>, vector<128x128xf32>,
    return
  }
  func.func @transform_0(%arg0: i32) -> (i32, i32) {
    %c0_i32 = arith.constant 0 : i32
    %c0_i32_0 = arith.constant 0 : i32
    return %arg0, %c0_i32 : i32, i32
  }
  func.func @transform_1(%arg0: i32) -> (i32, i32) {
    %c0_i32 = arith.constant 0 : i32
    %c0_i32_0 = arith.constant 0 : i32
    %c0_i32_1 = arith.constant 0 : i32
    return %c0_i32, %c0_i32_0 : i32, i32
  }
  func.func @transform_2(%arg0: i32) -> (i32, i32) {
    %c0_i32 = arith.constant 0 : i32
    %c0_i32_0 = arith.constant 0 : i32
    %c0_i32_1 = arith.constant 0 : i32
    return %c0_i32, %c0_i32_0 : i32, i32
  }
  func.func @transform_3(%arg0: i32) -> (i32, i32) {
    %c0_i32 = arith.constant 0 : i32
    %c0_i32_0 = arith.constant 0 : i32
    return %arg0, %c0_i32 : i32, i32
  }
}

</mosaic_0001>

<bundles_post_ra>
// kernel: tpu_custom_call.1
= control target key start
LH: loop header
LB: loop body
LE: loop exit
PB: predicated region body
PF: predicated region fallthrough
CT: control target
= control target key end

     0   :  { %8 = vsyncpa [#allocation3], 0  ;;  %s731_s0 = inlined_call_operand.vmem [shape: f32[384,16], index: 0, kind: input, shape index: {}]   ;;  %s732_s1 = inlined_call_operand.vmem [shape: f32[16,128], index: 1, kind: input, shape index: {}]   ;;  %s733_s2 = inlined_call_operand.vmem [shape: f32[1,128], index: 2, kind: input, shape index: {}]   ;;  %s734_s3 = inlined_call_operand.hbm [shape: f32[384,128], index: 3, kind: output, shape index: {}]  }
   0x1   :  { %10 = vsyncpa [#allocation3 + $0x1], 0  ;;  %s581_s12 = smov 0   ;;  %s583_s13 = smov 0  }
   0x2   :  { %s585_s14 = smov 0   ;;  %s587_s15 = smov 0  }
   0x3 LB: > { %s602_s16 = sadd.s32 4294967295, %s557_s15   ;;  %s418_s17 = sadd.s32 4294967294, %s557_s15   ;;  %s557_s15 = sphi %s587_s15, %s740_s15   ;;  %s553_s14 = sphi %s585_s14, %s739_s14   ;;  %s549_s13 = sphi %s583_s13, %s738_s13   ;;  %s545_s12 = sphi %s581_s12, %s737_s12  }
   0x4   : > { %s606_s18 = sadd.s32 1, %s557_s15   ;;  %s91_s19 = sadd.s32 1, %s553_s14 }
   0x5   : > { %s88_s20 = ssub.s32 %s557_s15, %s606_s18  ;;  %p101_p0 = scmp.ne.s32.totalorder %s553_s14, %s549_s13 }
   0x6   : > { %p89_p1 = scmp.eq.s32.totalorder %s88_s20, 0  ;;  %p102_p2 = scmp.eq.s32.totalorder %s602_s16, 2 }
   0x7   : > { %p107_p3 = scmp.ne.s32.totalorder %s549_s13, %s545_s12  ;;  %p108_p4 = scmp.eq.s32.totalorder %s418_s17, 2 }
   0x8   : > { %s617_s21 = scalar_select %p89_p1, %s553_s14, %s91_s19  }
   0x9   : > { %p619_p5 = por %p102_p2, %p101_p0  ;;  %p623_p6 = por %p108_p4, %p107_p3 }
   0xa   : > { %p421_p7 = scmp.ge.s32.totalorder %s557_s15, 1  ;;  %p141_p8 = scmp.lt.s32.totalorder %s557_s15, 4 }
   0xc   : > { %p142_p9 = pnand %p421_p7, %p141_p8 }
   0xd   : > { %s423_s28 = sshll.u32 (!%p142_p9), %s602_s16, 4  ;;  %s162_s6 = sand.u32 (!%p142_p9), 1, %s549_s13  }
   0xe   : > { %145 = sbr.rel (%p142_p9) target bundleno = 189 (0xbd), region = 32  ;;  %p166_p10 = scmp.lt.s32.totalorder (!%p142_p9), %s423_s28, 47 }
   0xf   : > { %s422_s9 = sshll.u32 (!%p142_p9), %s162_s6, 7  ;;  %s446_s11 = sshll.u32 (!%p142_p9), %s602_s16, 7 }
  0x10   : > { %s665_s10 = scalar_lea.vmem (!%p142_p9), [#allocation2], %s422_s9  ;;  %s352_s20 = scalar_lea.hbm (!%p142_p9), %s734_s3, %s446_s11 }
  0x11   : > { %s353_s16 = sshll.u32 (!%p142_p9), %s665_s10, 4  ;;  %s355_s24 = sshll.u32 (!%p142_p9), %s352_s20, 4  ;;  %s354_s16 = int_to_ptr.vmem [resolvable:$true] %s353_s16  ;;  %s356_s24 = int_to_ptr.hbm [resolvable:$true] %s355_s24 }
  0x12   : > { %s341_s25 = scalar_lea.sflag (!%p142_p9), [#allocation3], %s162_s6  ;;  %s509_s26 = sshra.s32 (!%p142_p9), %s356_s24, 4  ;;  %s510_s26 = int_to_ptr.hbm [resolvable:$true] %s509_s26 }
  0x13   : > { %v189_v0 = vld [vmem:[%s732_s1 + $0x8] sm:$0xff]  ;;  %v188_v1 = vld [vmem:[%s732_s1] sm:$0xff]  ;;  %s742_s28 = smov (!%p166_p10, %s423_s28), 47  ;;  %vm194_vm0 = vcmask 130048   ;;  %s511_s27 = scalar_lea.hbm %s510_s26, 128 }
  0x14   : > { %448 = vmatpush.msra.mxu2 %v189_v0  ;;  %449 = vmatpush.msra.mxu3 %v189_v0  ;;  %s424_s29 = sshll.u32 %s742_s28, 3  ;;  %v659_v18 = vld [vmem:[%s733_s2] ss:$0 sm:$0xff]  ;;  %p512_p11 = scmp.ne.s32.totalorder %s510_s26, %s511_s27 }
  0x15   : > { %257 = vmatpush.msra.mxu0 %v189_v0  ;;  %447 = vmatpush.msra.mxu1 %v189_v0  ;;  %s169_s5 = scalar_lea.vmem %s731_s0, %s424_s29  ;;  %s515_s30 = scalar_lea.hbm %s734_s3, 384 }
  0x16   : > { %451 = vmatpush.msra.mxu2 %v188_v1  ;;  %452 = vmatpush.msra.mxu3 %v188_v1  ;;  %v180_v2 = vld [vmem:[%s169_s5 + $0x40] sm:$0xff]  ;;  %v181_v6 = vld [vmem:[%s169_s5 + $0x48] sm:$0xff]  ;;  %v182_v10 = vld [vmem:[%s169_s5 + $0x50] sm:$0xff]  ;;  %p513_p12 = pnand %p512_p11, %p619_p5  ;;  %p516_p0 = scmp.lt.s32.totalorder %s510_s26, %s734_s3 }
  0x17   : > { %258 = vmatpush.msra.mxu0 %v188_v1  ;;  %450 = vmatpush.msra.mxu1 %v188_v1  ;;  %v184_v3 = vld [vmem:[%s169_s5 + $0x60] sm:$0xff]  ;;  %v185_v7 = vld [vmem:[%s169_s5 + $0x68] sm:$0xff]  ;;  %v186_v11 = vld [vmem:[%s169_s5 + $0x70] sm:$0xff]  ;;  %p517_p1 = scmp.lt.s32.totalorder %s515_s30, %s511_s27 }
  0x18   : > { %v172_v4 = vld [vmem:[%s169_s5] sm:$0xff]  ;;  %433 = vmatmul.msk.f32.vlgmr.msra.gmra.mxu2 %vm194_vm0, %v180_v2  ;;  %437 = vmatmul.msk.f32.vlgmr.msra.gmra.mxu3 %vm194_vm0, %v184_v3  ;;  %v173_v8 = vld [vmem:[%s169_s5 + $0x8] sm:$0xff]  ;;  %v174_v12 = vld [vmem:[%s169_s5 + $0x10] sm:$0xff]  ;;  %p514_p13 = pneg %p513_p12 }
  0x19   : > { %v176_v5 = vld [vmem:[%s169_s5 + $0x20] sm:$0xff]  ;;  %425 = vmatmul.msk.f32.vlgmr.msra.gmra.mxu0 %vm194_vm0, %v172_v4  ;;  %v177_v9 = vld [vmem:[%s169_s5 + $0x28] sm:$0xff]  ;;  %v178_v13 = vld [vmem:[%s169_s5 + $0x30] sm:$0xff]  ;;  %p518_p2 = por %p517_p1, %p516_p0 }
  0x1a   : > { %429 = vmatmul.msk.f32.vlgmr.msra.gmra.mxu1 %vm194_vm0, %v176_v5  ;;  %v183_v14 = vld [vmem:[%s169_s5 + $0x58] sm:$0xff] }
  0x1b   : > { %v187_v15 = vld [vmem:[%s169_s5 + $0x78] sm:$0xff]  ;;  %p519_p3 = pnand %p518_p2, %p514_p13 }
  0x1c   : > { %v175_v16 = vld [vmem:[%s169_s5 + $0x18] sm:$0xff] }
  0x1d   : > { %v179_v17 = vld [vmem:[%s169_s5 + $0x38] sm:$0xff] }
  0x20   : > { %434 = vmatmul.msk.f32.gmra.mxu2 %vm194_vm0, %v181_v6  ;;  %438 = vmatmul.msk.f32.gmra.mxu3 %vm194_vm0, %v185_v7 }
  0x21   : > { %426 = vmatmul.msk.f32.gmra.mxu0 %vm194_vm0, %v173_v8 }
  0x22   : > { %430 = vmatmul.msk.f32.gmra.mxu1 %vm194_vm0, %v177_v9 }
  0x28   : > { %435 = vmatmul.msk.f32.gmra.mxu2 %vm194_vm0, %v182_v10  ;;  %439 = vmatmul.msk.f32.gmra.mxu3 %vm194_vm0, %v186_v11 }
  0x29   : > { %427 = vmatmul.msk.f32.gmra.mxu0 %vm194_vm0, %v174_v12 }
  0x2a   : > { %431 = vmatmul.msk.f32.gmra.mxu1 %vm194_vm0, %v178_v13 }
  0x30   : > { %436 = vmatmul.msk.f32.gmra.mxu2 %vm194_vm0, %v183_v14  ;;  %440 = vmatmul.msk.f32.gmra.mxu3 %vm194_vm0, %v187_v15 }
  0x31   : > { %428 = vmatmul.msk.f32.gmra.mxu0 %vm194_vm0, %v175_v16 }
  0x32   : > { %432 = vmatmul.msk.f32.gmra.mxu1 %vm194_vm0, %v179_v17 }
  0x96   : > { %v260_v19 = vpop.f32.mrf.mxu0 }
  0x97   : > { %v272_v20 = vpop.f32.mrf.mxu1  ;;  %v261_v21 = vadd.f32 %v659_v18, %v260_v19 }
  0x98   : > { %v273_v22 = vadd.f32 %v659_v18, %v272_v20 }
  0x99   : > { %v308_v23 = vmax.f32 %v261_v21, 0.0 }
  0x9a   : > { %v312_v24 = vmax.f32 %v273_v22, 0.0 }
  0x9b   : > { %324 = vst [vmem:[%s665_s10] sm:$0xff] %v308_v23  ;;  %v284_v25 = vpop.f32.mrf.mxu2  ;;  %v296_v26 = vpop.f32.mrf.mxu3 }
  0x9c   : > { %328 = vst [vmem:[%s665_s10 + $0x20] sm:$0xff] %v312_v24  ;;  %v285_v27 = vadd.f32 %v659_v18, %v284_v25  ;;  %v297_v28 = vadd.f32 %v659_v18, %v296_v26 }
  0x9e   : > { %v316_v29 = vmax.f32 %v285_v27, 0.0  ;;  %v320_v30 = vmax.f32 %v297_v28, 0.0  ;;  %v263_v31 = vpop.f32.mrf.mxu0 }
  0x9f   : > { %v275_v32 = vpop.f32.mrf.mxu1  ;;  %v264_v33 = vadd.f32 %v659_v18, %v263_v31 }
  0xa0   : > { %v276_v34 = vadd.f32 %v659_v18, %v275_v32  ;;  %332 = vst [vmem:[%s665_s10 + $0x40] sm:$0xff] %v316_v29 }
  0xa1   : > { %336 = vst [vmem:[%s665_s10 + $0x60] sm:$0xff] %v320_v30  ;;  %v309_v35 = vmax.f32 %v264_v33, 0.0 }
  0xa2   : > { %v313_v36 = vmax.f32 %v276_v34, 0.0 }
  0xa3   : > { %325 = vst [vmem:[%s665_s10 + $0x8] sm:$0xff] %v309_v35  ;;  %v287_v37 = vpop.f32.mrf.mxu2  ;;  %v299_v38 = vpop.f32.mrf.mxu3 }
  0xa4   : > { %329 = vst [vmem:[%s665_s10 + $0x28] sm:$0xff] %v313_v36  ;;  %v288_v39 = vadd.f32 %v659_v18, %v287_v37  ;;  %v300_v40 = vadd.f32 %v659_v18, %v299_v38 }
  0xa6   : > { %v317_v41 = vmax.f32 %v288_v39, 0.0  ;;  %v321_v42 = vmax.f32 %v300_v40, 0.0  ;;  %v266_v43 = vpop.f32.mrf.mxu0 }
  0xa7   : > { %v278_v44 = vpop.f32.mrf.mxu1  ;;  %v267_v45 = vadd.f32 %v659_v18, %v266_v43 }
  0xa8   : > { %v279_v46 = vadd.f32 %v659_v18, %v278_v44  ;;  %333 = vst [vmem:[%s665_s10 + $0x48] sm:$0xff] %v317_v41 }
  0xa9   : > { %337 = vst [vmem:[%s665_s10 + $0x68] sm:$0xff] %v321_v42  ;;  %v310_v47 = vmax.f32 %v267_v45, 0.0 }
  0xaa   : > { %v314_v48 = vmax.f32 %v279_v46, 0.0 }
  0xab   : > { %326 = vst [vmem:[%s665_s10 + $0x10] sm:$0xff] %v310_v47  ;;  %v290_v49 = vpop.f32.mrf.mxu2  ;;  %v302_v50 = vpop.f32.mrf.mxu3 }
  0xac   : > { %330 = vst [vmem:[%s665_s10 + $0x30] sm:$0xff] %v314_v48  ;;  %v291_v51 = vadd.f32 %v659_v18, %v290_v49  ;;  %v303_v52 = vadd.f32 %v659_v18, %v302_v50 }
  0xae   : > { %v318_v53 = vmax.f32 %v291_v51, 0.0  ;;  %v322_v54 = vmax.f32 %v303_v52, 0.0  ;;  %v269_v55 = vpop.f32.mrf.mxu0 }
  0xaf   : > { %v281_v56 = vpop.f32.mrf.mxu1  ;;  %v270_v57 = vadd.f32 %v659_v18, %v269_v55 }
  0xb0   : > { %v282_v58 = vadd.f32 %v659_v18, %v281_v56  ;;  %334 = vst [vmem:[%s665_s10 + $0x50] sm:$0xff] %v318_v53 }
  0xb1   : > { %338 = vst [vmem:[%s665_s10 + $0x70] sm:$0xff] %v322_v54  ;;  %v311_v59 = vmax.f32 %v270_v57, 0.0 }
  0xb2   : > { %v315_v60 = vmax.f32 %v282_v58, 0.0 }
  0xb3   : > { %327 = vst [vmem:[%s665_s10 + $0x18] sm:$0xff] %v311_v59  ;;  %v293_v61 = vpop.f32.mrf.mxu2  ;;  %v305_v62 = vpop.f32.mrf.mxu3 }
  0xb4   : > { %331 = vst [vmem:[%s665_s10 + $0x38] sm:$0xff] %v315_v60  ;;  %v294_v63 = vadd.f32 %v659_v18, %v293_v61  ;;  %v306_v0 = vadd.f32 %v659_v18, %v305_v62 }
  0xb6   : > { %v319_v1 = vmax.f32 %v294_v63, 0.0  ;;  %v323_v2 = vmax.f32 %v306_v0, 0.0 }
  0xb8   : > { %335 = vst [vmem:[%s665_s10 + $0x58] sm:$0xff] %v319_v1 }
  0xb9   : > { %339 = vst [vmem:[%s665_s10 + $0x78] sm:$0xff] %v323_v2 }
  0xba   : > { %522 = shalt.err (!%p519_p3)
}
  0xbb   : > { %s559_s6 = smov 128   ;;  %s560_s7 = smov 8  }
  0xbc   : > { %453 = dma.vmem_to_hbm [thread:$0]  (%p619_p5), %s354_s16, 2048, %s356_s24, %s341_s25, %s559_s6, %s559_s6, %s560_s7  }
  0xbd PF: > { %p459_p4 = scmp.ge.s32.totalorder %s557_s15, 2  ;;  %s370_s8 = sand.u32 1, %s545_s12  }
  0xbe   : > { %s371_s9 = scalar_lea.sflag [#allocation3], %s370_s8 }
  0xbf   : > { %p456_p7 = pnand %p459_p4, %p623_p6 }
  0xc1   : > { %p457_p8 = pneg %p456_p7 }
  0xc3   : > { %540 = dma.done.wait (%p457_p8), %s371_s9, 2048  }
  0xc4   : > { %542 = vsyncadd (%p457_p8), %s371_s9, 4294965248  ;;  %p13_p9 = scmp.ge.s32.totalorder %s606_s18, 5   ;;  %s737_s12 = smov %s549_s13 }
  0xc5   : > { %s738_s13 = smov %s553_s14  ;;  %s739_s14 = smov %s617_s21 }
  0xc6   : > { %s740_s15 = smov %s606_s18  ;;  %15 = sbr.rel (!%p13_p9) target bundleno = 3 (0x3), region = 67 }
  0xcb   :  { %377 = vsyncpa [#allocation3], 1 }
  0xcc   :  { %379 = vsyncpa [#allocation3 + $0x1], 1 }

</bundles_post_ra>
